<compile_context>
chip_gen: v7x
topology: tpu7x:2x2x1
jax: 0.10.0
libtpu: 0.0.40
codegen_flags: <defaults>
</compile_context>

<pallas_src>
import jax
import jax.numpy as jnp
from jax.experimental import pallas as pl
from jax.experimental.pallas import tpu as pltpu

_BN_EPS = 1e-5


# ----------------------------- fused kernel ---------------------------------


def fused_kernel(x_ref, s_ref, w1_ref, b1_ref, w2_ref, b2_ref,
                 head_scale_ref, hw_str_ref, hb_ref, out_ref, xsum_ref):
    # grid = (batch_tiles, hw_tiles); HW axis is the (arbitrary) reduction axis.
    k = pl.program_id(1)

    @pl.when(k == 0)
    def _():
        xsum_ref[...] = jnp.zeros_like(xsum_ref)

    # ---- image branch: accumulate the spatial sum of x (lane reduce, XLU) ----
    # TODO(synk): the timm backbone (args.model / args.pretrained) is runtime-configurable
    # and cannot be reproduced here; it is replaced by a deterministic GAP + Linear(3,512)
    # surrogate. Conv2d(1,3,1) + GAP + Linear(3,512) + head_w_img collapse (rank-1 in the
    # spatial mean) into the precomputed head_scale / head-bias rows used below.
    xsum_ref[...] += jnp.sum(x_ref[...], axis=1, keepdims=True)        # (TB, 1)

    @pl.when(k == pl.num_programs(1) - 1)
    def _():
        # ---- structured branch: Linear(4,512)+BN+ReLU+Swish+[Dropout]+Linear(512,128)+BN+Swish
        # (BN folded into w1/b1, w2/b2; s/w1 zero-padded to K=128; dropout identity in eval)
        h = jnp.dot(s_ref[...], w1_ref[...],
                    preferred_element_type=jnp.float32) + b1_ref[...]  # (TB, 512)
        h = jnp.maximum(h, 0.0)                                        # ReLU
        h = h * jax.nn.sigmoid(h)                                      # Swish (EUP sigmoid)
        h2 = jnp.dot(h, w2_ref[...],
                     preferred_element_type=jnp.float32) + b2_ref[...] # (TB, 128)
        str_feat = h2 * jax.nn.sigmoid(h2)                             # Swish

        # ---- head: image contribution is rank-1 (x_sum * head_scale, 1/HW folded),
        # structured contribution is a (TB,128)@(128,NC_PAD) matmul; img_bias@W + head_b
        # already folded into hb. The 5 eval-mode dropouts average to a single pass.
        out_ref[...] = (
            xsum_ref[...] * head_scale_ref[...]
            + jnp.dot(str_feat, hw_str_ref[...], preferred_element_type=jnp.float32)
            + hb_ref[...]
        )                                                              # (TB, NC_PAD)


# ----------------------------- tiling ----------------------------------------


def _pick_tiles(B, hw_pad, x_budget_bytes=16 * 1024 * 1024):
    """Pick (batch_tile, hw_tile) so the double-buffered x block stays under budget
    and the grid has >= 2 steps (DMA/compute overlap; batch axis can shard across TCs)."""
    # batch tile: multiple of 8 (sublane-aligned) dividing B; prefer >= 2 batch steps.
    tb = B
    if B % 8 == 0:
        for cand in (256, 128, 64, 32, 16, 8):
            if B % cand == 0:
                tb = cand
                if B // cand >= 2:
                    break

    # HW tile: multiple of 128 dividing hw_pad, with 2 * TB * hw_tile * 4B <= budget.
    n_chunks = hw_pad // 128
    max_chunks = max(1, x_budget_bytes // (2 * 4 * tb * 128))
    if B // tb >= 2 or n_chunks < 2:
        cap = n_chunks
    else:
        cap = max(1, n_chunks // 2)   # force >= 2 HW steps when the batch grid is 1
    hw_chunks = 1
    for c in range(1, n_chunks + 1):
        if n_chunks % c == 0 and c <= max_chunks and c <= cap:
            hw_chunks = c
    return tb, hw_chunks * 128


# ----------------------------- wrapper --------------------------------------


def timm_models_forward(img, str_feature, params):
    B = img.shape[0]
    x = img.reshape(B, -1).astype(jnp.float32)         # single input channel -> (B, HW)
    HW = x.shape[1]

    # lane-dense pad of the dominant HBM stream (zeros don't change the spatial sum)
    hw_pad = ((HW + 127) // 128) * 128
    if hw_pad != HW:
        x = jnp.pad(x, ((0, 0), (0, hw_pad - HW)))

    # structured features: zero-pad K from 4 -> 128 (removes degenerate K=4 MXU matmul)
    s = jnp.pad(str_feature.astype(jnp.float32), ((0, 0), (0, 128 - 4)))   # (B, 128)

    # --- fold 1x1 conv + surrogate backbone head into one (1,512) scale/bias row ---
    img_scale = jnp.dot(params["conv_w"], params["backbone_w"])                     # (1, 512)
    img_bias = jnp.dot(params["conv_b"], params["backbone_w"]) + params["backbone_b"]

    # --- fold eval-mode BN (running stats (0,1), affine (1,0)) into the Linears ---
    inv_std = 1.0 / jnp.sqrt(1.0 + _BN_EPS)
    w1f = jnp.pad(params["str_w1"] * inv_std, ((0, 128 - 4), (0, 0)))     # (128, 512)
    b1f = params["str_b1"] * inv_std                                      # (1, 512)
    w2f = params["str_w2"] * inv_std                                      # (512, 128)
    b2f = params["str_b2"] * inv_std                                      # (1, 128)

    # --- pad head to a lane-dense output width (multiple of 128) ---
    num_classes = params["head_b"].shape[1]
    nc_pad = max(128, ((num_classes + 127) // 128) * 128)
    pad = nc_pad - num_classes
    hw_img = jnp.pad(params["head_w_img"], ((0, 0), (0, pad)))            # (512, nc_pad)
    hw_str = jnp.pad(params["head_w_str"], ((0, 0), (0, pad)))            # (128, nc_pad)
    hb = jnp.pad(params["head_b"], ((0, 0), (0, pad)))                    # (1,   nc_pad)

    # --- rank-1 fold of the image branch through the head (1/HW folded into the row) ---
    head_scale = jnp.dot(img_scale, hw_img) * (1.0 / HW)                  # (1, nc_pad)
    hb_fold = jnp.dot(img_bias, hw_img) + hb                              # (1, nc_pad)

    TB, HW_TILE = _pick_tiles(B, hw_pad)
    grid = (B // TB, hw_pad // HW_TILE)

    def x_map(i, k):
        return (i, k)

    def batch_map(i, k):
        return (i, 0)

    def const_map(i, k):
        return (0, 0)

    out_padded = pl.pallas_call(
        fused_kernel,
        out_shape=jax.ShapeDtypeStruct((B, nc_pad), jnp.float32),
        grid_spec=pltpu.PrefetchScalarGridSpec(
            num_scalar_prefetch=0,
            grid=grid,
            in_specs=[
                pl.BlockSpec((TB, HW_TILE), x_map),       # x (lane-dense, tiled over HW)
                pl.BlockSpec((TB, 128), batch_map),       # str_feature (zero-padded K)
                pl.BlockSpec((128, 512), const_map),      # w1 (BN-folded, zero-padded K)
                pl.BlockSpec((1, 512), const_map),        # b1
                pl.BlockSpec((512, 128), const_map),      # w2 (BN-folded)
                pl.BlockSpec((1, 128), const_map),        # b2
                pl.BlockSpec((1, nc_pad), const_map),     # head_scale (rank-1 img fold)
                pl.BlockSpec((128, nc_pad), const_map),   # head W (str half)
                pl.BlockSpec((1, nc_pad), const_map),     # head bias (img bias folded in)
            ],
            out_specs=pl.BlockSpec((TB, nc_pad), batch_map),
            scratch_shapes=[pltpu.VMEM((TB, 1), jnp.float32)],  # running spatial sum
        ),
        compiler_params=pltpu.CompilerParams(
            dimension_semantics=("parallel", "arbitrary"),   # batch shards across TCs
            vmem_limit_bytes=48 * 1024 * 1024,               # headroom on v7x (64 MiB)
        ),
    )(x, s, w1f, b1f, w2f, b2f, head_scale, hw_str, hb_fold)

    return out_padded[:, :num_classes]


# ----------------------------- parameters -----------------------------------


def init_params(key, num_classes=8):
    ks = jax.random.split(key, 6)

    def lin(k, fan_in, fan_out):
        # PyTorch nn.Linear default init, stored transposed as (in, out) so the
        # kernel computes y = x @ W + b.
        bound = 1.0 / jnp.sqrt(fan_in)
        kw, kb = jax.random.split(k)
        w = jax.random.uniform(kw, (fan_in, fan_out), jnp.float32, -bound, bound)
        b = jax.random.uniform(kb, (1, fan_out), jnp.float32, -bound, bound)
        return w, b

    # Conv2d(1, 3, 1): weight (3,1,1,1), bias (3,) -> stored as (1, 3) row vectors.
    conv_w = jax.random.uniform(ks[0], (1, 3), jnp.float32, -1.0, 1.0)
    conv_b = jax.random.uniform(ks[1], (1, 3), jnp.float32, -1.0, 1.0)
    backbone_w, backbone_b = lin(ks[2], 3, 512)      # surrogate timm head -> 512
    str_w1, str_b1 = lin(ks[3], 4, 512)
    str_w2, str_b2 = lin(ks[4], 512, 128)
    head_w, head_b = lin(ks[5], 512 + 128, num_classes)

    return dict(
        conv_w=conv_w, conv_b=conv_b,
        backbone_w=backbone_w, backbone_b=backbone_b,
        str_w1=str_w1, str_b1=str_b1, str_w2=str_w2, str_b2=str_b2,
        head_w_img=head_w[:512], head_w_str=head_w[512:], head_b=head_b,
    )


if __name__ == "__main__":
    key = jax.random.PRNGKey(0)
    k_img, k_str, k_par = jax.random.split(key, 3)

    B, H, W = 2, 16, 16
    num_classes = 8
    img = jax.random.normal(k_img, (B, 1, H, W), jnp.float32)
    str_feature = jax.random.normal(k_str, (B, 4), jnp.float32)
    params = init_params(k_par, num_classes=num_classes)

    out = jax.jit(timm_models_forward)(img, str_feature, params)
    out = jax.block_until_ready(out)
    assert out.shape == (B, num_classes)
    assert bool(jnp.all(jnp.isfinite(out)))
    print("KERNEL_OK")
</pallas_src>

<mosaic_0001>
module attributes {stable_mosaic.version = 11 : i64} {
  func.func @fused_kernel(%arg0: i32, %arg1: i32, %arg2: memref<2x128xf32, #tpu.memory_space<vmem>>, %arg3: memref<2x128xf32, #tpu.memory_space<vmem>>, %arg4: memref<128x512xf32, #tpu.memory_space<vmem>>, %arg5: memref<1x512xf32, #tpu.memory_space<vmem>>, %arg6: memref<512x128xf32, #tpu.memory_space<vmem>>, %arg7: memref<1x128xf32, #tpu.memory_space<vmem>>, %arg8: memref<1x128xf32, #tpu.memory_space<vmem>>, %arg9: memref<128x128xf32, #tpu.memory_space<vmem>>, %arg10: memref<1x128xf32, #tpu.memory_space<vmem>>, %arg11: memref<2x128xf32, #tpu.memory_space<vmem>>, %arg12: memref<2x1xf32, #tpu.memory_space<vmem>>) attributes {dimension_semantics = [#tpu.dimension_semantics<parallel>, #tpu.dimension_semantics<arbitrary>], iteration_bounds = array<i64: 1, 2>, scalar_prefetch = 0 : i64, scratch_operands = 1 : i64, tpu.core_type = #tpu.core_type<tc>, window_params = [{transform_indices = @transform_0, window_bounds = array<i64: 2, 128>}, {transform_indices = @transform_1, window_bounds = array<i64: 2, 128>}, {pipeline_mode = #tpu.pipeline_mode<synchronous>, transform_indices = @transform_2, window_bounds = array<i64: 128, 512>}, {pipeline_mode = #tpu.pipeline_mode<synchronous>, transform_indices = @transform_3, window_bounds = array<i64: 1, 512>}, {pipeline_mode = #tpu.pipeline_mode<synchronous>, transform_indices = @transform_4, window_bounds = array<i64: 512, 128>}, {pipeline_mode = #tpu.pipeline_mode<synchronous>, transform_indices = @transform_5, window_bounds = array<i64: 1, 128>}, {pipeline_mode = #tpu.pipeline_mode<synchronous>, transform_indices = @transform_6, window_bounds = array<i64: 1, 128>}, {pipeline_mode = #tpu.pipeline_mode<synchronous>, transform_indices = @transform_7, window_bounds = array<i64: 128, 128>}, {pipeline_mode = #tpu.pipeline_mode<synchronous>, transform_indices = @transform_8, window_bounds = array<i64: 1, 128>}, {transform_indices = @transform_9, window_bounds = array<i64: 2, 128>}]} {
    %c0_i32 = arith.constant 0 : i32
    %0 = arith.cmpi eq, %arg1, %c0_i32 : i32
    %1 = arith.extui %0 : i1 to i32
    %c0_i32_0 = arith.constant 0 : i32
    %2 = arith.cmpi ne, %1, %c0_i32_0 : i32
    scf.if %2 {
      %cst_7 = arith.constant 0.000000e+00 : f32
      %12 = vector.broadcast %cst_7 : f32 to vector<2x1xf32>
      %c0_8 = arith.constant 0 : index
      %c0_9 = arith.constant 0 : index
      %13 = vector.load %arg12[%c0_8, %c0_9] : memref<2x1xf32, #tpu.memory_space<vmem>>, vector<2x1xf32>
      tpu.vector_store %arg12[%c0_8, %c0_9], %12 {strides = array<i32>} : memref<2x1xf32, #tpu.memory_space<vmem>>, vector<2x1xf32>,
    } else {
    }
    %c0 = arith.constant 0 : index
    %c0_1 = arith.constant 0 : index
    %3 = vector.load %arg12[%c0, %c0_1] : memref<2x1xf32, #tpu.memory_space<vmem>>, vector<2x1xf32>
    %c0_2 = arith.constant 0 : index
    %c0_3 = arith.constant 0 : index
    %4 = vector.load %arg2[%c0_2, %c0_3] : memref<2x128xf32, #tpu.memory_space<vmem>>, vector<2x128xf32>
    %cst = arith.constant dense<0.000000e+00> : vector<2xf32>
    %5 = vector.multi_reduction <add>, %4, %cst [1] : vector<2x128xf32> to vector<2xf32>
    %6 = vector.shape_cast %5 : vector<2xf32> to vector<2x1xf32>
    %7 = arith.addf %3, %6 : vector<2x1xf32>
    %c0_4 = arith.constant 0 : index
    %c0_5 = arith.constant 0 : index
    %8 = vector.load %arg12[%c0_4, %c0_5] : memref<2x1xf32, #tpu.memory_space<vmem>>, vector<2x1xf32>
    tpu.vector_store %arg12[%c0_4, %c0_5], %7 {strides = array<i32>} : memref<2x1xf32, #tpu.memory_space<vmem>>, vector<2x1xf32>,
    %c1_i32 = arith.constant 1 : i32
    %9 = arith.cmpi eq, %arg1, %c1_i32 : i32
    %10 = arith.extui %9 : i1 to i32
    %c0_i32_6 = arith.constant 0 : i32
    %11 = arith.cmpi ne, %10, %c0_i32_6 : i32
    scf.if %11 {
      %c0_7 = arith.constant 0 : index
      %c0_8 = arith.constant 0 : index
      %12 = vector.load %arg3[%c0_7, %c0_8] : memref<2x128xf32, #tpu.memory_space<vmem>>, vector<2x128xf32>
      %c0_9 = arith.constant 0 : index
      %c0_10 = arith.constant 0 : index
      %13 = vector.load %arg4[%c0_9, %c0_10] : memref<128x512xf32, #tpu.memory_space<vmem>>, vector<128x512xf32>
      %cst_11 = arith.constant dense<0.000000e+00> : vector<2x512xf32>
      %14 = tpu.matmul %12, %13, %cst_11 {dimension_numbers = #tpu.dot_dimension_numbers<[1], [0], [0], [1], [0, 0, 1, 1], [], []>} : vector<2x128xf32>, vector<128x512xf32>, vector<2x512xf32> -> vector<2x512xf32>
      %c0_12 = arith.constant 0 : index
      %c0_13 = arith.constant 0 : index
      %15 = vector.load %arg5[%c0_12, %c0_13] : memref<1x512xf32, #tpu.memory_space<vmem>>, vector<1x512xf32>
      %16 = vector.broadcast %15 : vector<1x512xf32> to vector<2x512xf32>
      %17 = arith.addf %14, %16 : vector<2x512xf32>
      %cst_14 = arith.constant 0.000000e+00 : f32
      %18 = vector.broadcast %cst_14 : f32 to vector<2x512xf32>
      %19 = arith.maximumf %17, %18 : vector<2x512xf32>
      %20 = arith.negf %19 : vector<2x512xf32>
      %21 = math.exp %20 : vector<2x512xf32>
      %cst_15 = arith.constant 1.000000e+00 : f32
      %22 = vector.broadcast %cst_15 : f32 to vector<2x512xf32>
      %23 = arith.addf %22, %21 : vector<2x512xf32>
      %24 = arith.divf %22, %23 : vector<2x512xf32>
      %25 = arith.mulf %19, %24 : vector<2x512xf32>
      %c0_16 = arith.constant 0 : index
      %c0_17 = arith.constant 0 : index
      %26 = vector.load %arg6[%c0_16, %c0_17] : memref<512x128xf32, #tpu.memory_space<vmem>>, vector<512x128xf32>
      %cst_18 = arith.constant dense<0.000000e+00> : vector<2x128xf32>
      %27 = tpu.matmul %25, %26, %cst_18 {dimension_numbers = #tpu.dot_dimension_numbers<[1], [0], [0], [1], [0, 0, 1, 1], [], []>} : vector<2x512xf32>, vector<512x128xf32>, vector<2x128xf32> -> vector<2x128xf32>
      %c0_19 = arith.constant 0 : index
      %c0_20 = arith.constant 0 : index
      %28 = vector.load %arg7[%c0_19, %c0_20] : memref<1x128xf32, #tpu.memory_space<vmem>>, vector<1x128xf32>
      %29 = vector.broadcast %28 : vector<1x128xf32> to vector<2x128xf32>
      %30 = arith.addf %27, %29 : vector<2x128xf32>
      %31 = arith.negf %30 : vector<2x128xf32>
      %32 = math.exp %31 : vector<2x128xf32>
      %cst_21 = arith.constant 1.000000e+00 : f32
      %33 = vector.broadcast %cst_21 : f32 to vector<2x128xf32>
      %34 = arith.addf %33, %32 : vector<2x128xf32>
      %35 = arith.divf %33, %34 : vector<2x128xf32>
      %36 = arith.mulf %30, %35 : vector<2x128xf32>
      %c0_22 = arith.constant 0 : index
      %c0_23 = arith.constant 0 : index
      %37 = vector.load %arg12[%c0_22, %c0_23] : memref<2x1xf32, #tpu.memory_space<vmem>>, vector<2x1xf32>
      %c0_24 = arith.constant 0 : index
      %c0_25 = arith.constant 0 : index
      %38 = vector.load %arg8[%c0_24, %c0_25] : memref<1x128xf32, #tpu.memory_space<vmem>>, vector<1x128xf32>
      %39 = vector.broadcast %37 : vector<2x1xf32> to vector<2x128xf32>
      %40 = vector.broadcast %38 : vector<1x128xf32> to vector<2x128xf32>
      %41 = arith.mulf %39, %40 : vector<2x128xf32>
      %c0_26 = arith.constant 0 : index
      %c0_27 = arith.constant 0 : index
      %42 = vector.load %arg9[%c0_26, %c0_27] : memref<128x128xf32, #tpu.memory_space<vmem>>, vector<128x128xf32>
      %cst_28 = arith.constant dense<0.000000e+00> : vector<2x128xf32>
      %43 = tpu.matmul %36, %42, %cst_28 {dimension_numbers = #tpu.dot_dimension_numbers<[1], [0], [0], [1], [0, 0, 1, 1], [], []>} : vector<2x128xf32>, vector<128x128xf32>, vector<2x128xf32> -> vector<2x128xf32>
      %44 = arith.addf %41, %43 : vector<2x128xf32>
      %c0_29 = arith.constant 0 : index
      %c0_30 = arith.constant 0 : index
      %45 = vector.load %arg10[%c0_29, %c0_30] : memref<1x128xf32, #tpu.memory_space<vmem>>, vector<1x128xf32>
      %46 = vector.broadcast %45 : vector<1x128xf32> to vector<2x128xf32>
      %47 = arith.addf %44, %46 : vector<2x128xf32>
      %c0_31 = arith.constant 0 : index
      %c0_32 = arith.constant 0 : index
      %48 = vector.load %arg11[%c0_31, %c0_32] : memref<2x128xf32, #tpu.memory_space<vmem>>, vector<2x128xf32>
      tpu.vector_store %arg11[%c0_31, %c0_32], %47 {strides = array<i32>} : memref<2x128xf32, #tpu.memory_space<vmem>>, vector<2x128xf32>,
    } else {
    }
    return
  }
  func.func @transform_0(%arg0: i32, %arg1: i32) -> (i32, i32) {
    %c0_i32 = arith.constant 0 : i32
    return %arg0, %arg1 : i32, i32
  }
  func.func @transform_1(%arg0: i32, %arg1: i32) -> (i32, i32) {
    %c0_i32 = arith.constant 0 : i32
    %c0_i32_0 = arith.constant 0 : i32
    return %arg0, %c0_i32 : i32, i32
  }
  func.func @transform_2(%arg0: i32, %arg1: i32) -> (i32, i32) {
    %c0_i32 = arith.constant 0 : i32
    %c0_i32_0 = arith.constant 0 : i32
    %c0_i32_1 = arith.constant 0 : i32
    return %c0_i32, %c0_i32_0 : i32, i32
  }
  func.func @transform_3(%arg0: i32, %arg1: i32) -> (i32, i32) {
    %c0_i32 = arith.constant 0 : i32
    %c0_i32_0 = arith.constant 0 : i32
    %c0_i32_1 = arith.constant 0 : i32
    return %c0_i32, %c0_i32_0 : i32, i32
  }
  func.func @transform_4(%arg0: i32, %arg1: i32) -> (i32, i32) {
    %c0_i32 = arith.constant 0 : i32
    %c0_i32_0 = arith.constant 0 : i32
    %c0_i32_1 = arith.constant 0 : i32
    return %c0_i32, %c0_i32_0 : i32, i32
  }
  func.func @transform_5(%arg0: i32, %arg1: i32) -> (i32, i32) {
    %c0_i32 = arith.constant 0 : i32
    %c0_i32_0 = arith.constant 0 : i32
    %c0_i32_1 = arith.constant 0 : i32
    return %c0_i32, %c0_i32_0 : i32, i32
  }
  func.func @transform_6(%arg0: i32, %arg1: i32) -> (i32, i32) {
    %c0_i32 = arith.constant 0 : i32
    %c0_i32_0 = arith.constant 0 : i32
    %c0_i32_1 = arith.constant 0 : i32
    return %c0_i32, %c0_i32_0 : i32, i32
  }
  func.func @transform_7(%arg0: i32, %arg1: i32) -> (i32, i32) {
    %c0_i32 = arith.constant 0 : i32
    %c0_i32_0 = arith.constant 0 : i32
    %c0_i32_1 = arith.constant 0 : i32
    return %c0_i32, %c0_i32_0 : i32, i32
  }
  func.func @transform_8(%arg0: i32, %arg1: i32) -> (i32, i32) {
    %c0_i32 = arith.constant 0 : i32
    %c0_i32_0 = arith.constant 0 : i32
    %c0_i32_1 = arith.constant 0 : i32
    return %c0_i32, %c0_i32_0 : i32, i32
  }
  func.func @transform_9(%arg0: i32, %arg1: i32) -> (i32, i32) {
    %c0_i32 = arith.constant 0 : i32
    %c0_i32_0 = arith.constant 0 : i32
    return %arg0, %c0_i32 : i32, i32
  }
}

</mosaic_0001>

<bundles_post_ra>
// kernel: timm_models_forward.1
= control target key start
LH: loop header
LB: loop body
LE: loop exit
PB: predicated region body
PF: predicated region fallthrough
CT: control target
= control target key end

     0   :  { %14 = vsyncpa [#allocation4], 0  ;;  %s1513_s30 = smov 0   ;;  %s1515_s10 = smov 0   ;;  %s2028_s0 = inlined_call_operand.vmem [shape: f32[2,256], index: 0, kind: input, shape index: {}]   ;;  %s2029_s1 = inlined_call_operand.vmem [shape: f32[2,128], index: 1, kind: input, shape index: {}]   ;;  %s2030_s2 = inlined_call_operand.vmem [shape: f32[128,512], index: 2, kind: input, shape index: {}]   ;;  %s2031_s3 = inlined_call_operand.vmem [shape: f32[1,512], index: 3, kind: input, shape index: {}]   ;;  %s2032_s4 = inlined_call_operand.vmem [shape: f32[512,128], index: 4, kind: input, shape index: {}]   ;;  %s2033_s5 = inlined_call_operand.vmem [shape: f32[1,128], index: 5, kind: input, shape index: {}]   ;;  %s2034_s6 = inlined_call_operand.vmem [shape: f32[1,128], index: 6, kind: input, shape index: {}]   ;;  %s2035_s7 = inlined_call_operand.vmem [shape: f32[128,128], index: 7, kind: input, shape index: {}]   ;;  %s2036_s8 = inlined_call_operand.vmem [shape: f32[1,128], index: 8, kind: input, shape index: {}]   ;;  %s2037_s9 = inlined_call_operand.hbm [shape: f32[2,128], index: 9, kind: output, shape index: {}]  }
   0x1   :  { %s1517_s11 = smov 0  }
   0x2 LB: > { %s1052_s12 = sadd.s32 4294967295, %s1455_s11   ;;  %s29_s13 = sadd.s32 1, %s1451_s10  ;;  %s1455_s11 = sphi %s1517_s11, %s20_s11   ;;  %s1451_s10 = sphi %s1515_s10, %s2040_s10   ;;  %s1447_s30 = sphi %s1513_s30, %s2039_s30  }
   0x3   : > { %p30_p0 = scmp.ge.s32.totalorder %s29_s13, 2  ;;  %p1056_p1 = scmp.ge.s32.totalorder %s1455_s11, 1 }
   0x4   : > { %p314_p2 = scmp.lt.s32.totalorder %s1455_s11, 3 }
   0x5   : > { %s2042_s13 = smov (%p30_p0, %s29_s13), 0 }
   0x6   : > { %p315_p3 = pnand %p1056_p1, %p314_p2 }
   0x7   : > { %p354_p4 = scmp.lt.s32.totalorder (!%p315_p3), %s1447_s30, 1  ;;  %p1058_p5 = scmp.ne.s32.totalorder (!%p315_p3), %s1447_s30, 0 }
   0x8   : > { %318 = sbr.rel (%p315_p3) target bundleno = 922 (0x39a), region = 56 }
   0xf   : > { %s355_s14 = scalar_select %p354_p4, %s1447_s30, 1 }
  0x10   : > { %367 = sbr.rel (%p1058_p5) target bundleno = 23 (0x17), region = 60  ;;  %vm368_vm0 = vcmask (!%p1058_p5), 1024   ;;  %v1457_v0 = vmov (!%p1058_p5), 0.0  }
  0x11   : > { %s1057_s15 = sshll.u32 %s355_s14, 1  ;;  %369 = vst.msk [vmem:[#allocation2] sm:$0x3] (!%p1058_p5), %vm368_vm0, %v1457_v0 }
  0x12   : > { %s359_s18 = scalar_lea.vmem %s2028_s0, %s1057_s15 }
  0x17 PF: > { %v371_v1 = vld [vmem:[%s359_s18] sm:$0x3]  ;;  %vm372_vm1 = vcmask 1041408   ;;  %vm377_vm2 = vcmask 1024   ;;  %p1059_p6 = scmp.ne.s32.totalorder %s1447_s30, 1 }
  0x18   : > { %v373_v2 = vsel %vm372_vm1, %v371_v1, 0.0  ;;  %v370_v3 = vld [vmem:[#allocation2] sm:$0x3]  ;;  %v385_v6 = vld [vmem:[%s2030_s2 + $0x8] sm:$0xff] (!%p1059_p6)  ;;  %v387_v8 = vld [vmem:[%s2030_s2 + $0x18] sm:$0xff] (!%p1059_p6)  ;;  %v1458_v13 = vmov (!%p1059_p6), 0.0  }
  0x19   : > { %374 = vadd.xlane.f32.xlu0 %v373_v2  ;;  %v389_v7 = vld [vmem:[%s2030_s2 + $0x28] sm:$0xff] (!%p1059_p6)  ;;  %v391_v10 = vld [vmem:[%s2030_s2 + $0x38] sm:$0xff] (!%p1059_p6)  ;;  %v384_v11 = vld [vmem:[%s2030_s2] sm:$0xff] (!%p1059_p6)  ;;  %534 = vmatprep.mubr.f32.mxu0 (!%p1059_p6), %v1458_v13  ;;  %vm1460_vm3 = vmmov (!%p1059_p6), 0  }
  0x1a   : > { %v1194_v9 = vpack.c.bf16 (!%p1059_p6), %v389_v7, %v385_v6  ;;  %v388_v12 = vld [vmem:[%s2030_s2 + $0x20] sm:$0xff] (!%p1059_p6)  ;;  %605 = vmatprep.mubr.f32.mxu1 (!%p1059_p6), %v1458_v13  ;;  %v1226_v14 = vpack.c.bf16 (!%p1059_p6), %v391_v10, %v387_v8  ;;  %v386_v16 = vld [vmem:[%s2030_s2 + $0x10] sm:$0xff] (!%p1059_p6)  ;;  %v393_v18 = vld [vmem:[%s2030_s2 + $0x48] sm:$0xff] (!%p1059_p6) }
  0x1b   : > { %v1196_v15 = vpack.c.bf16 (!%p1059_p6), %v388_v12, %v384_v11  ;;  %v390_v17 = vld [vmem:[%s2030_s2 + $0x30] sm:$0xff] (!%p1059_p6)  ;;  %v397_v20 = vld [vmem:[%s2030_s2 + $0x68] sm:$0xff] (!%p1059_p6)  ;;  %v395_v21 = vld [vmem:[%s2030_s2 + $0x58] sm:$0xff] (!%p1059_p6) }
  0x1c   : > { %1195 = vmatprep.subr.bf16.mxu0 (!%p1059_p6), %v1194_v9  ;;  %v1228_v19 = vpack.c.bf16 (!%p1059_p6), %v390_v17, %v386_v16  ;;  %v399_v22 = vld [vmem:[%s2030_s2 + $0x78] sm:$0xff] (!%p1059_p6)  ;;  %1227 = vmatprep.subr.bf16.mxu1 (!%p1059_p6), %v1226_v14  ;;  %v1198_v23 = vpack.c.bf16 (!%p1059_p6), %v397_v20, %v393_v18  ;;  %v392_v25 = vld [vmem:[%s2030_s2 + $0x40] sm:$0xff] (!%p1059_p6)  ;;  %v394_v27 = vld [vmem:[%s2030_s2 + $0x50] sm:$0xff] (!%p1059_p6) }
  0x1d   : > { %1197 = vmatpush1.bf16.msra.mxu0 (!%p1059_p6), %v1196_v15  ;;  %v1230_v24 = vpack.c.bf16 (!%p1059_p6), %v399_v22, %v395_v21  ;;  %v396_v26 = vld [vmem:[%s2030_s2 + $0x60] sm:$0xff] (!%p1059_p6)  ;;  %v398_v29 = vld [vmem:[%s2030_s2 + $0x70] sm:$0xff] (!%p1059_p6)  ;;  %v401_v30 = vld [vmem:[%s2030_s2 + $0x88] sm:$0xff] (!%p1059_p6) }
  0x1e   : > { %1229 = vmatpush1.bf16.msra.mxu1 (!%p1059_p6), %v1228_v19  ;;  %v1200_v28 = vpack.c.bf16 (!%p1059_p6), %v396_v26, %v392_v25  ;;  %v405_v31 = vld [vmem:[%s2030_s2 + $0xa8] sm:$0xff] (!%p1059_p6)  ;;  %1199 = vmatprep.subr.bf16.mxu0 (!%p1059_p6), %v1198_v23  ;;  %v1232_v32 = vpack.c.bf16 (!%p1059_p6), %v398_v29, %v394_v27  ;;  %v403_v34 = vld [vmem:[%s2030_s2 + $0x98] sm:$0xff] (!%p1059_p6)  ;;  %v400_v36 = vld [vmem:[%s2030_s2 + $0x80] sm:$0xff] (!%p1059_p6) }
  0x1f   : > { %1231 = vmatprep.subr.bf16.mxu1 (!%p1059_p6), %v1230_v24  ;;  %v1202_v33 = vpack.c.bf16 (!%p1059_p6), %v405_v31, %v401_v30  ;;  %v407_v35 = vld [vmem:[%s2030_s2 + $0xb8] sm:$0xff] (!%p1059_p6)  ;;  %v404_v38 = vld [vmem:[%s2030_s2 + $0xa0] sm:$0xff] (!%p1059_p6)  ;;  %v402_v39 = vld [vmem:[%s2030_s2 + $0x90] sm:$0xff] (!%p1059_p6) }
  0x20   : > { %v1234_v37 = vpack.c.bf16 (!%p1059_p6), %v407_v35, %v403_v34  ;;  %v406_v40 = vld [vmem:[%s2030_s2 + $0xb0] sm:$0xff] (!%p1059_p6)  ;;  %v1204_v41 = vpack.c.bf16 (!%p1059_p6), %v404_v38, %v400_v36  ;;  %v409_v42 = vld [vmem:[%s2030_s2 + $0xc8] sm:$0xff] (!%p1059_p6)  ;;  %v411_v44 = vld [vmem:[%s2030_s2 + $0xd8] sm:$0xff] (!%p1059_p6) }
  0x21   : > { %1201 = vmatpush1.bf16.msra.mxu0 (!%p1059_p6), %v1200_v28  ;;  %v413_v43 = vld [vmem:[%s2030_s2 + $0xe8] sm:$0xff] (!%p1059_p6)  ;;  %v1236_v45 = vpack.c.bf16 (!%p1059_p6), %v406_v40, %v402_v39  ;;  %v415_v47 = vld [vmem:[%s2030_s2 + $0xf8] sm:$0xff] (!%p1059_p6)  ;;  %v408_v48 = vld [vmem:[%s2030_s2 + $0xc0] sm:$0xff] (!%p1059_p6) }
  0x22   : > { %1233 = vmatpush1.bf16.msra.mxu1 (!%p1059_p6), %v1232_v32  ;;  %1203 = vmatprep.subr.bf16.mxu0 (!%p1059_p6), %v1202_v33  ;;  %v1206_v46 = vpack.c.bf16 (!%p1059_p6), %v413_v43, %v409_v42  ;;  %v412_v49 = vld [vmem:[%s2030_s2 + $0xe0] sm:$0xff] (!%p1059_p6)  ;;  %v1238_v50 = vpack.c.bf16 (!%p1059_p6), %v415_v47, %v411_v44  ;;  %v410_v51 = vld [vmem:[%s2030_s2 + $0xd0] sm:$0xff] (!%p1059_p6)  ;;  %v417_v53 = vld [vmem:[%s2030_s2 + $0x108] sm:$0xff] (!%p1059_p6) }
  0x23   : > { %1235 = vmatprep.subr.bf16.mxu1 (!%p1059_p6), %v1234_v37  ;;  %v414_v52 = vld [vmem:[%s2030_s2 + $0xf0] sm:$0xff] (!%p1059_p6)  ;;  %v421_v54 = vld [vmem:[%s2030_s2 + $0x128] sm:$0xff] (!%p1059_p6)  ;;  %v419_v55 = vld [vmem:[%s2030_s2 + $0x118] sm:$0xff] (!%p1059_p6)  ;;  %v1208_v57 = vpack.c.bf16 (!%p1059_p6), %v412_v49, %v408_v48 }
  0x24   : > { %v423_v56 = vld [vmem:[%s2030_s2 + $0x138] sm:$0xff] (!%p1059_p6)  ;;  %v1240_v58 = vpack.c.bf16 (!%p1059_p6), %v414_v52, %v410_v51  ;;  %v1210_v59 = vpack.c.bf16 (!%p1059_p6), %v421_v54, %v417_v53  ;;  %v416_v60 = vld [vmem:[%s2030_s2 + $0x100] sm:$0xff] (!%p1059_p6)  ;;  %v418_v62 = vld [vmem:[%s2030_s2 + $0x110] sm:$0xff] (!%p1059_p6) }
  0x25   : > { %1205 = vmatpush1.bf16.msra.mxu0 (!%p1059_p6), %v1204_v41  ;;  %v420_v61 = vld [vmem:[%s2030_s2 + $0x120] sm:$0xff] (!%p1059_p6)  ;;  %v1242_v63 = vpack.c.bf16 (!%p1059_p6), %v423_v56, %v419_v55  ;;  %v422_v0 = vld [vmem:[%s2030_s2 + $0x130] sm:$0xff] (!%p1059_p6)  ;;  %v425_v1 = vld [vmem:[%s2030_s2 + $0x148] sm:$0xff] (!%p1059_p6) }
  0x26   : > { %1237 = vmatpush1.bf16.msra.mxu1 (!%p1059_p6), %v1236_v45  ;;  %1207 = vmatprep.subr.bf16.mxu0 (!%p1059_p6), %v1206_v46  ;;  %v429_v2 = vld [vmem:[%s2030_s2 + $0x168] sm:$0xff] (!%p1059_p6)  ;;  %v1244_v6 = vpack.c.bf16 (!%p1059_p6), %v422_v0, %v418_v62  ;;  %v424_v8 = vld [vmem:[%s2030_s2 + $0x140] sm:$0xff] (!%p1059_p6)  ;;  %v426_v10 = vld [vmem:[%s2030_s2 + $0x150] sm:$0xff] (!%p1059_p6) }
  0x27   : > { %1239 = vmatprep.subr.bf16.mxu1 (!%p1059_p6), %v1238_v50  ;;  %v1214_v7 = vpack.c.bf16 (!%p1059_p6), %v429_v2, %v425_v1  ;;  %v428_v9 = vld [vmem:[%s2030_s2 + $0x160] sm:$0xff] (!%p1059_p6)  ;;  %v430_v12 = vld [vmem:[%s2030_s2 + $0x170] sm:$0xff] (!%p1059_p6)  ;;  %v433_v14 = vld [vmem:[%s2030_s2 + $0x188] sm:$0xff] (!%p1059_p6) }
  0x28   : > { %v437_v15 = vld [vmem:[%s2030_s2 + $0x1a8] sm:$0xff] (!%p1059_p6)  ;;  %v435_v16 = vld [vmem:[%s2030_s2 + $0x198] sm:$0xff] (!%p1059_p6)  ;;  %v1216_v18 = vpack.c.bf16 (!%p1059_p6), %v428_v9, %v424_v8  ;;  %v1248_v19 = vpack.c.bf16 (!%p1059_p6), %v430_v12, %v426_v10  ;;  %v432_v21 = vld [vmem:[%s2030_s2 + $0x180] sm:$0xff] (!%p1059_p6) }
  0x29   : > { %1209 = vmatpush1.bf16.msra.mxu0 (!%p1059_p6), %v1208_v57  ;;  %v439_v17 = vld [vmem:[%s2030_s2 + $0x1b8] sm:$0xff] (!%p1059_p6)  ;;  %v1218_v20 = vpack.c.bf16 (!%p1059_p6), %v437_v15, %v433_v14  ;;  %v436_v22 = vld [vmem:[%s2030_s2 + $0x1a0] sm:$0xff] (!%p1059_p6)  ;;  %v434_v23 = vld [vmem:[%s2030_s2 + $0x190] sm:$0xff] (!%p1059_p6) }
  0x2a   : > { %1241 = vmatpush1.bf16.msra.mxu1 (!%p1059_p6), %v1240_v58  ;;  %1211 = vmatprep.subr.bf16.mxu0 (!%p1059_p6), %v1210_v59  ;;  %v1250_v24 = vpack.c.bf16 (!%p1059_p6), %v439_v17, %v435_v16  ;;  %v438_v25 = vld [vmem:[%s2030_s2 + $0x1b0] sm:$0xff] (!%p1059_p6)  ;;  %v441_v26 = vld [vmem:[%s2030_s2 + $0x1c8] sm:$0xff] (!%p1059_p6)  ;;  %v443_v28 = vld [vmem:[%s2030_s2 + $0x1d8] sm:$0xff] (!%p1059_p6)  ;;  %v1220_v30 = vpack.c.bf16 (!%p1059_p6), %v436_v22, %v432_v21 }
  0x2b   : > { %1243 = vmatprep.subr.bf16.mxu1 (!%p1059_p6), %v1242_v63  ;;  %v445_v27 = vld [vmem:[%s2030_s2 + $0x1e8] sm:$0xff] (!%p1059_p6)  ;;  %v447_v29 = vld [vmem:[%s2030_s2 + $0x1f8] sm:$0xff] (!%p1059_p6)  ;;  %v1252_v31 = vpack.c.bf16 (!%p1059_p6), %v438_v25, %v434_v23  ;;  %v440_v33 = vld [vmem:[%s2030_s2 + $0x1c0] sm:$0xff] (!%p1059_p6) }
  0x2c   : > { %v1222_v32 = vpack.c.bf16 (!%p1059_p6), %v445_v27, %v441_v26  ;;  %v444_v34 = vld [vmem:[%s2030_s2 + $0x1e0] sm:$0xff] (!%p1059_p6)  ;;  %v1254_v35 = vpack.c.bf16 (!%p1059_p6), %v447_v29, %v443_v28  ;;  %v442_v36 = vld [vmem:[%s2030_s2 + $0x1d0] sm:$0xff] (!%p1059_p6)  ;;  %v661_v42 = vld [vmem:[%s2032_s4 + $0x88] sm:$0xff] (!%p1059_p6) }
  0x2d   : > { %v446_v37 = vld [vmem:[%s2030_s2 + $0x1f0] sm:$0xff] (!%p1059_p6)  ;;  %v1224_v38 = vpack.c.bf16 (!%p1059_p6), %v444_v34, %v440_v33  ;;  %v383_v40 = vld [vmem:[%s2029_s1] sm:$0x3] (!%p1059_p6)  ;;  %v693_v45 = vld [vmem:[%s2032_s4 + $0x188] sm:$0xff] (!%p1059_p6) }
  0x2e   : > { %1245 = vmatpush1.bf16.msra.mxu1 (!%p1059_p6), %v1244_v6  ;;  %v1256_v39 = vpack.c.bf16 (!%p1059_p6), %v446_v37, %v442_v36  ;;  %v660_v41 = vld [vmem:[%s2032_s4 + $0x80] sm:$0xff] (!%p1059_p6)  ;;  %v645_v47 = vld [vmem:[%s2032_s4 + $0x8] sm:$0xff] (!%p1059_p6)  ;;  %v662_v53 = vld [vmem:[%s2032_s4 + $0x90] sm:$0xff] (!%p1059_p6) }
  0x2f   : > { %v692_v43 = vld [vmem:[%s2032_s4 + $0x180] sm:$0xff] (!%p1059_p6)  ;;  %v1258_v44 = vpack.c.bf16 (!%p1059_p6), %v661_v42, %v660_v41  ;;  %v677_v51 = vld [vmem:[%s2032_s4 + $0x108] sm:$0xff] (!%p1059_p6)  ;;  %v663_v54 = vld [vmem:[%s2032_s4 + $0x98] sm:$0xff] (!%p1059_p6) }
  0x30   : > { %v644_v46 = vld [vmem:[%s2032_s4] sm:$0xff] (!%p1059_p6)  ;;  %v1290_v48 = vpack.c.bf16 (!%p1059_p6), %v693_v45, %v692_v43  ;;  %v694_v55 = vld [vmem:[%s2032_s4 + $0x190] sm:$0xff] (!%p1059_p6)  ;;  %v1262_v56 = vpack.c.bf16 (!%p1059_p6), %v663_v54, %v662_v53  ;;  %v695_v57 = vld [vmem:[%s2032_s4 + $0x198] sm:$0xff] (!%p1059_p6) }
  0x31   : > { %v1260_v49 = vpack.c.bf16 (!%p1059_p6), %v645_v47, %v644_v46  ;;  %v676_v50 = vld [vmem:[%s2032_s4 + $0x100] sm:$0xff] (!%p1059_p6)  ;;  %v646_v58 = vld [vmem:[%s2032_s4 + $0x10] sm:$0xff] (!%p1059_p6)  ;;  %v647_v59 = vld [vmem:[%s2032_s4 + $0x18] sm:$0xff] (!%p1059_p6) }
  0x32   : > { %v1292_v52 = vpack.c.bf16 (!%p1059_p6), %v677_v51, %v676_v50  ;;  %v678_v62 = vld [vmem:[%s2032_s4 + $0x110] sm:$0xff] (!%p1059_p6)  ;;  %v679_v63 = vld [vmem:[%s2032_s4 + $0x118] sm:$0xff] (!%p1059_p6)  ;;  %v664_v1 = vld [vmem:[%s2032_s4 + $0xa0] sm:$0xff] (!%p1059_p6) }
  0x33   : > { %v1296_v0 = vpack.c.bf16 (!%p1059_p6), %v679_v63, %v678_v62  ;;  %v665_v2 = vld [vmem:[%s2032_s4 + $0xa8] sm:$0xff] (!%p1059_p6)  ;;  %v648_v6 = vld [vmem:[%s2032_s4 + $0x20] sm:$0xff] (!%p1059_p6)  ;;  %v666_v14 = vld [vmem:[%s2032_s4 + $0xb0] sm:$0xff] (!%p1059_p6) }
  0x34   : > { %v680_v10 = vld [vmem:[%s2032_s4 + $0x120] sm:$0xff] (!%p1059_p6)  ;;  %v667_v15 = vld [vmem:[%s2032_s4 + $0xb8] sm:$0xff] (!%p1059_p6)  ;;  %v698_v16 = vld [vmem:[%s2032_s4 + $0x1b0] sm:$0xff] (!%p1059_p6) }
  0x35   : > { %v1270_v17 = vpack.c.bf16 (!%p1059_p6), %v667_v15, %v666_v14  ;;  %v682_v23 = vld [vmem:[%s2032_s4 + $0x130] sm:$0xff] (!%p1059_p6)  ;;  %v668_v26 = vld [vmem:[%s2032_s4 + $0xc0] sm:$0xff] (!%p1059_p6)  ;;  %v669_v27 = vld [vmem:[%s2032_s4 + $0xc8] sm:$0xff] (!%p1059_p6) }
  0x36   : > { %v700_v28 = vld [vmem:[%s2032_s4 + $0x1c0] sm:$0xff] (!%p1059_p6)  ;;  %v1274_v29 = vpack.c.bf16 (!%p1059_p6), %v669_v27, %v668_v26  ;;  %v685_v36 = vld [vmem:[%s2032_s4 + $0x148] sm:$0xff] (!%p1059_p6)  ;;  %v703_v42 = vld [vmem:[%s2032_s4 + $0x1d8] sm:$0xff] (!%p1059_p6) }
  0x37   : > { %v654_v43 = vld [vmem:[%s2032_s4 + $0x50] sm:$0xff] (!%p1059_p6)  ;;  %v672_v50 = vld [vmem:[%s2032_s4 + $0xe0] sm:$0xff] (!%p1059_p6)  ;;  %v673_v51 = vld [vmem:[%s2032_s4 + $0xe8] sm:$0xff] (!%p1059_p6) }
  0x38   : > { %v686_v47 = vld [vmem:[%s2032_s4 + $0x150] sm:$0xff] (!%p1059_p6)  ;;  %v1282_v53 = vpack.c.bf16 (!%p1059_p6), %v673_v51, %v672_v50  ;;  %v705_v54 = vld [vmem:[%s2032_s4 + $0x1e8] sm:$0xff] (!%p1059_p6)  ;;  %v675_v63 = vld [vmem:[%s2032_s4 + $0xf8] sm:$0xff] (!%p1059_p6) }
  0x39   : > { %v674_v62 = vld [vmem:[%s2032_s4 + $0xf0] sm:$0xff] (!%p1059_p6)  ;;  %v448_v14 = vld [vmem:[%s2031_s3] sm:$0xf] (!%p1059_p6) }
  0xa3   : > { %382 = sbr.rel (%p1059_p6) target bundleno = 897 (0x381), region = 64 }
  0xa6   : > { %v375_v4 = vpop.xlane.xlu0 %374 }
  0xa7   : > { %v376_v5 = vadd.f32 %v375_v4, %v370_v3  ;;  %v427_v3 = vld [vmem:[%s2030_s2 + $0x158] sm:$0xff] (!%p1059_p6) }
  0xa8   : > { %v431_v4 = vld [vmem:[%s2030_s2 + $0x178] sm:$0xff] (!%p1059_p6) }
  0xa9   : > { %378 = vst.msk [vmem:[#allocation2] sm:$0x3] %vm377_vm2, %v376_v5  ;;  %v1212_v5 = vpack.c.bf16 (!%p1059_p6), %v420_v61, %v416_v60  ;;  %v1246_v11 = vpack.c.bf16 (!%p1059_p6), %v431_v4, %v427_v3  ;;  %v1294_v60 = vpack.c.bf16 (!%p1059_p6), %v695_v57, %v694_v55  ;;  %v1264_v61 = vpack.c.bf16 (!%p1059_p6), %v647_v59, %v646_v58  ;;  %v696_v3 = vld [vmem:[%s2032_s4 + $0x1a0] sm:$0xff] (!%p1059_p6) }
  0xaa   : > { %v1266_v4 = vpack.c.bf16 %v665_v2, %v664_v1  ;;  %v656_v55 = vld [vmem:[%s2032_s4 + $0x60] sm:$0xff]  ;;  %v1286_v1 = vpack.c.bf16 %v675_v63, %v674_v62  ;;  %v707_v2 = vld [vmem:[%s2032_s4 + $0x1f8] sm:$0xff]  ;;  %v881_v62 = vld [vmem:[%s2035_s7 + $0x28] sm:$0xff] }
  0xab   : > { %1213 = vmatpush1.bf16.msra.mxu0 %v1212_v5  ;;  %1247 = vmatprep.subr.bf16.mxu1 %v1246_v11  ;;  %v697_v5 = vld [vmem:[%s2032_s4 + $0x1a8] sm:$0xff]  ;;  %v688_v59 = vld [vmem:[%s2032_s4 + $0x160] sm:$0xff] }
  0xac   : > { %1215 = vmatprep.subr.bf16.mxu0 %v1214_v7  ;;  %1249 = vmatpush1.bf16.msra.mxu1 %v1248_v19  ;;  %v649_v7 = vld [vmem:[%s2032_s4 + $0x28] sm:$0xff]  ;;  %v1298_v8 = vpack.c.bf16 %v697_v5, %v696_v3  ;;  %v650_v19 = vld [vmem:[%s2032_s4 + $0x30] sm:$0xff] }
  0xad   : > { %1251 = vmatprep.subr.bf16.mxu1 %v1250_v24  ;;  %v1268_v9 = vpack.c.bf16 %v649_v7, %v648_v6  ;;  %v681_v11 = vld [vmem:[%s2032_s4 + $0x128] sm:$0xff]  ;;  %v683_v24 = vld [vmem:[%s2032_s4 + $0x138] sm:$0xff]  ;;  %v658_v3 = vld [vmem:[%s2032_s4 + $0x70] sm:$0xff] }
  0xae   : > { %v1300_v12 = vpack.c.bf16 %v681_v11, %v680_v10  ;;  %v1304_v25 = vpack.c.bf16 %v683_v24, %v682_v23  ;;  %v690_v7 = vld [vmem:[%s2032_s4 + $0x170] sm:$0xff]  ;;  %v450_v10 = vlaneseq }
  0xaf   : > { %1217 = vmatpush1.bf16.msra.mxu0 %v1216_v18  ;;  %v699_v18 = vld [vmem:[%s2032_s4 + $0x1b8] sm:$0xff] }
  0xb0   : > { %1219 = vmatprep.subr.bf16.mxu0 %v1218_v20  ;;  %1253 = vmatpush1.bf16.msra.mxu1 %v1252_v31  ;;  %v651_v20 = vld [vmem:[%s2032_s4 + $0x38] sm:$0xff]  ;;  %v1302_v21 = vpack.c.bf16 %v699_v18, %v698_v16  ;;  %v652_v31 = vld [vmem:[%s2032_s4 + $0x40] sm:$0xff]  ;;  %v451_v11 = vshrl.u32 %v450_v10, 7  ;;  %v889_v10 = vld [vmem:[%s2035_s7 + $0x68] sm:$0xff] }
  0xb1   : > { %1255 = vmatprep.subr.bf16.mxu1 %v1254_v35  ;;  %v1272_v22 = vpack.c.bf16 %v651_v20, %v650_v19  ;;  %v684_v35 = vld [vmem:[%s2032_s4 + $0x140] sm:$0xff] }
  0xb2   : > { %v1308_v37 = vpack.c.bf16 %v685_v36, %v684_v35  ;;  %v460_v15 = vsub.s32 2, %v451_v11  ;;  %v456_v16 = vsub.s32 1, %v451_v11 }
  0xb3   : > { %1221 = vmatpush1.bf16.msra.mxu0 %v1220_v30  ;;  %v701_v30 = vld [vmem:[%s2032_s4 + $0x1c8] sm:$0xff] }
  0xb4   : > { %1223 = vmatprep.subr.bf16.mxu0 %v1222_v32  ;;  %1257 = vmatpush1.bf16.msra.mxu1 %v1256_v39  ;;  %v653_v32 = vld [vmem:[%s2032_s4 + $0x48] sm:$0xff]  ;;  %v1306_v33 = vpack.c.bf16 %v701_v30, %v700_v28  ;;  %v671_v39 = vld [vmem:[%s2032_s4 + $0xd8] sm:$0xff]  ;;  %v461_v19 = vrot.slane %v448_v14, %v460_v15  ;;  %v457_v20 = vrot.slane %v448_v14, %v456_v16  ;;  %v862_v16 = vld [vmem:[#allocation2] sm:$0x3] }
  0xb5   : > { %1291 = vmatprep.subr.bf16.mxu1 %v1290_v48  ;;  %v1276_v34 = vpack.c.bf16 %v653_v32, %v652_v31  ;;  %v687_v48 = vld [vmem:[%s2032_s4 + $0x158] sm:$0xff] }
  0xb7   : > { %1225 = vmatpush1.bf16.msra.mxu0 %v1224_v38  ;;  %606 = vmatmul.mubr.f32.vlgmr.msra.gmra.mrb[0].mxu1 %v383_v40  ;;  %v670_v38 = vld [vmem:[%s2032_s4 + $0xd0] sm:$0xff] }
  0xb8   : > { %1259 = vmatprep.subr.bf16.mxu0 %v1258_v44  ;;  %1293 = vmatpush3.bf16.msra.mxu1 %v1292_v52  ;;  %v1278_v41 = vpack.c.bf16 %v671_v39, %v670_v38  ;;  %v655_v44 = vld [vmem:[%s2032_s4 + $0x58] sm:$0xff]  ;;  %v704_v52 = vld [vmem:[%s2032_s4 + $0x1e0] sm:$0xff] }
  0xb9   : > { %1295 = vmatprep.subr.bf16.mxu1 %v1294_v60  ;;  %v1280_v46 = vpack.c.bf16 %v655_v44, %v654_v43  ;;  %v1314_v57 = vpack.c.bf16 %v705_v54, %v704_v52  ;;  %v689_v60 = vld [vmem:[%s2032_s4 + $0x168] sm:$0xff]  ;;  %v876_v54 = vld [vmem:[%s2035_s7] sm:$0xff] }
  0xba   : > { %535 = vmatmul.mubr.f32.vlgmr.msra.gmra.mrb[0].mxu0 %v383_v40  ;;  %v702_v40 = vld [vmem:[%s2032_s4 + $0x1d0] sm:$0xff] }
  0xbb   : > { %1261 = vmatpush3.bf16.msra.mxu0 %v1260_v49  ;;  %v1310_v45 = vpack.c.bf16 %v703_v42, %v702_v40  ;;  %v1312_v49 = vpack.c.bf16 %v687_v48, %v686_v47 }
  0xbc   : > { %1263 = vmatprep.subr.bf16.mxu0 %v1262_v56  ;;  %1297 = vmatpush3.bf16.msra.mxu1 %v1296_v0  ;;  %v657_v56 = vld [vmem:[%s2032_s4 + $0x68] sm:$0xff]  ;;  %v706_v0 = vld [vmem:[%s2032_s4 + $0x1f0] sm:$0xff] }
  0xbd   : > { %1299 = vmatprep.subr.bf16.mxu1 %v1298_v8  ;;  %v1284_v58 = vpack.c.bf16 %v657_v56, %v656_v55  ;;  %v1318_v5 = vpack.c.bf16 %v707_v2, %v706_v0  ;;  %v691_v8 = vld [vmem:[%s2032_s4 + $0x178] sm:$0xff]  ;;  %v877_v55 = vld [vmem:[%s2035_s7 + $0x8] sm:$0xff]  ;;  %v882_v0 = vld [vmem:[%s2035_s7 + $0x30] sm:$0xff] }
  0xbe   : > { %v1323_v56 = vpack.c.bf16 %v877_v55, %v876_v54 }
  0xbf   : > { %1265 = vmatpush3.bf16.msra.mxu0 %v1264_v61  ;;  %v1316_v61 = vpack.c.bf16 %v689_v60, %v688_v59  ;;  %v879_v59 = vld [vmem:[%s2035_s7 + $0x18] sm:$0xff] }
  0xc0   : > { %1267 = vmatprep.subr.bf16.mxu0 %v1266_v4  ;;  %1301 = vmatpush3.bf16.msra.mxu1 %v1300_v12  ;;  %v659_v4 = vld [vmem:[%s2032_s4 + $0x78] sm:$0xff]  ;;  %v452_v12 = vsub.s32 0, %v451_v11 }
  0xc1   : > { %1303 = vmatprep.subr.bf16.mxu1 %v1302_v21  ;;  %v1288_v6 = vpack.c.bf16 %v659_v4, %v658_v3  ;;  %v884_v3 = vld [vmem:[%s2035_s7 + $0x40] sm:$0xff]  ;;  %v885_v4 = vld [vmem:[%s2035_s7 + $0x48] sm:$0xff] }
  0xc2   : > { %v453_v18 = vrot.slane %v448_v14, %v452_v12  ;;  %v890_v12 = vld [vmem:[%s2035_s7 + $0x70] sm:$0xff] }
  0xc3   : > { %1269 = vmatpush3.bf16.msra.mxu0 %v1268_v9  ;;  %v1320_v9 = vpack.c.bf16 %v691_v8, %v690_v7  ;;  %v887_v7 = vld [vmem:[%s2035_s7 + $0x58] sm:$0xff] }
  0xc4   : > { %1271 = vmatprep.subr.bf16.mxu0 %v1270_v17  ;;  %1305 = vmatpush3.bf16.msra.mxu1 %v1304_v25  ;;  %v464_v17 = vsub.s32 3, %v451_v11 }
  0xc5   : > { %1307 = vmatprep.subr.bf16.mxu1 %v1306_v33 }
  0xc6   : > { %v465_v21 = vrot.slane %v448_v14, %v464_v17  ;;  %v891_v14 = vld [vmem:[%s2035_s7 + $0x78] sm:$0xff]  ;;  %v1461_v17 = vmov 0  }
  0xc7   : > { %1273 = vmatpush3.bf16.msra.mxu0 %v1272_v22  ;;  %v1344_v15 = vpack.c.bf16 %v891_v14, %v890_v12  ;;  %1382 = vset.pattern.permute.xlu0 %v1461_v17 }
  0xc8   : > { %1275 = vmatprep.subr.bf16.mxu0 %v1274_v29  ;;  %1309 = vmatpush3.bf16.msra.mxu1 %v1308_v37 }
  0xc9   : > { %1311 = vmatprep.subr.bf16.mxu1 %v1310_v45  ;;  %866 = vperm.xlu0 %1382, %v862_v16  }
  0xcb   : > { %1277 = vmatpush3.bf16.msra.mxu0 %v1276_v34 }
  0xcc   : > { %1279 = vmatprep.subr.bf16.mxu0 %v1278_v41  ;;  %1313 = vmatpush3.bf16.msra.mxu1 %v1312_v49 }
  0xcd   : > { %1315 = vmatprep.subr.bf16.mxu1 %v1314_v57  ;;  %v1459_v57 = vmov 0.0|0.0  }
  0xcf   : > { %1281 = vmatpush3.bf16.msra.mxu0 %v1280_v46 }
  0xd0   : > { %1283 = vmatprep.subr.bf16.mxu0 %v1282_v53  ;;  %1317 = vmatpush3.bf16.msra.mxu1 %v1316_v61  ;;  %v880_v61 = vld [vmem:[%s2035_s7 + $0x20] sm:$0xff] }
  0xd1   : > { %1319 = vmatprep.subr.bf16.mxu1 %v1318_v5  ;;  %v1329_v63 = vpack.c.bf16 %v881_v62, %v880_v61  ;;  %v1335_v5 = vpack.c.bf16 %v885_v4, %v884_v3 }
  0xd3   : > { %1285 = vmatpush3.bf16.msra.mxu0 %v1284_v58  ;;  %v878_v58 = vld [vmem:[%s2035_s7 + $0x10] sm:$0xff] }
  0xd4   : > { %1287 = vmatprep.subr.bf16.mxu0 %v1286_v1  ;;  %1321 = vmatpush3.bf16.msra.mxu1 %v1320_v9  ;;  %v1326_v60 = vpack.c.bf16 %v879_v59, %v878_v58  ;;  %v883_v1 = vld [vmem:[%s2035_s7 + $0x38] sm:$0xff]  ;;  %v888_v9 = vld [vmem:[%s2035_s7 + $0x60] sm:$0xff] }
  0xd5   : > { %v1332_v2 = vpack.c.bf16 %v883_v1, %v882_v0  ;;  %v1341_v11 = vpack.c.bf16 %v889_v10, %v888_v9 }
  0xd7   : > { %1289 = vmatpush3.bf16.msra.mxu0 %v1288_v6  ;;  %v886_v6 = vld [vmem:[%s2035_s7 + $0x50] sm:$0xff] }
  0xd8   : > { %1322 = vmatprep.subr.bf16.mxu0 %v1459_v57  ;;  %v1338_v8 = vpack.c.bf16 %v887_v7, %v886_v6 }
 0x18a   : > { %v607_v24 = vpop.f32.mrb[0].mxu1 }
 0x18b   : > { %v608_v26 = vadd.f32 %v607_v24, %v461_v19  ;;  %v609_v28 = vpop.f32.mrb[1].mxu1 }
 0x18c   : > { %v610_v30 = vadd.f32 %v609_v28, %v465_v21 }
 0x18d   : > { %v536_v22 = vpop.f32.mrb[0].mxu0  ;;  %v614_v31 = vmax.f32 %v608_v26, 0.0 }
 0x18e   : > { %v537_v23 = vadd.f32 %v536_v22, %v453_v18  ;;  %v538_v25 = vpop.f32.mrb[1].mxu0  ;;  %v615_v34 = vmax.f32 %v610_v30, 0.0 }
 0x18f   : > { %v539_v27 = vadd.f32 %v538_v25, %v457_v20  ;;  %v1062_v35 = vmul.f32 -1.442695, %v614_v31  ;;  %v1064_v20 = vld [vmem:[%s2033_s5] ss:$0 sm:$0xff] }
 0x190   : > { %v612_v29 = vmax.f32 %v537_v23, 0.0  ;;  %v1063_v37 = vmul.f32 -1.442695, %v615_v34 }
 0x191   : > { %v613_v32 = vmax.f32 %v539_v27, 0.0 }
 0x192   : > { %v1060_v33 = vmul.f32 -1.442695, %v612_v29 }
 0x193   : > { %v1061_v36 = vmul.f32 -1.442695, %v613_v32 }
 0x194   : > { %1383 = vpow2.f32 %v1060_v33 }
 0x195   : > { %1385 = vpow2.f32 %v1062_v35  ;;  %v1067_v35 = vld [vmem:[%s2036_s8] ss:$0 sm:$0xff] }
 0x196   : > { %1387 = vpow2.f32 %v1061_v36 }
 0x197   : > { %1389 = vpow2.f32 %v1063_v37 }
 0x19e   : > { %v1384_v38 = vpop.eup %1383 }
 0x19f   : > { %v1386_v39 = vpop.eup %1385  ;;  %v628_v40 = vadd.f32 1.0, %v1384_v38 }
 0x1a0   : > { %v1388_v41 = vpop.eup %1387  ;;  %v630_v42 = vadd.f32 1.0, %v1386_v39 }
 0x1a1   : > { %v1390_v43 = vpop.eup %1389  ;;  %1391 = vrcp.f32 %v628_v40  ;;  %v629_v44 = vadd.f32 1.0, %v1388_v41 }
 0x1a2   : > { %1393 = vrcp.f32 %v630_v42  ;;  %v631_v45 = vadd.f32 1.0, %v1390_v43 }
 0x1a3   : > { %1395 = vrcp.f32 %v629_v44 }
 0x1a4   : > { %1397 = vrcp.f32 %v631_v45 }
 0x1ab   : > { %v1392_v46 = vpop.eup %1391 }
 0x1ac   : > { %v1394_v47 = vpop.eup %1393  ;;  %v640_v51 = vmul.f32 %v1392_v46, %v612_v29 }
 0x1ad   : > { %v1396_v48 = vpop.eup %1395  ;;  %v642_v53 = vmul.f32 %v1394_v47, %v614_v31  ;;  %v1066_v31 = vld [vmem:[%s2034_s6] ss:$0 sm:$0xff] }
 0x1ae   : > { %v1398_v49 = vpop.eup %1397  ;;  %v641_v50 = vmul.f32 %v1396_v48, %v613_v32  ;;  %v867_v32 = vpop.permute.xlu0 %866 }
 0x1af   : > { %v643_v52 = vmul.f32 %v1398_v49, %v615_v34  ;;  %v875_v33 = vmul.f32 %v1066_v31, %v867_v32 }
 0x1b0   : > { %779 = vmatprep.mubr.f32.mxu0 %v641_v50 }
 0x1b1   : > { %849 = vmatprep.mubr.f32.mxu1 %v643_v52  ;;  %780 = vmatmul.mubr.f32.vlgmr.msra.gmra.mrb[2].mxu0 %v640_v51 }
 0x1b2   : > { %850 = vmatmul.mubr.f32.vlgmr.msra.gmra.mrb[2].mxu1 %v642_v53  ;;  %1324 = vmatpush3.bf16.msra.mxu0 %v1323_v56 }
 0x1b3   : > { %1325 = vmatprep.subr.bf16.mxu0 %v1459_v57  ;;  %1191 = vmatprep.mubr.msk.f32.mxu0 %vm1460_vm3, %v1458_v13 }
 0x1b6   : > { %1327 = vmatpush3.bf16.msra.mxu0 %v1326_v60 }
 0x1b7   : > { %1328 = vmatprep.subr.bf16.mxu0 %v1459_v57 }
 0x1ba   : > { %1330 = vmatpush3.bf16.msra.mxu0 %v1329_v63 }
 0x1bb   : > { %1331 = vmatprep.subr.bf16.mxu0 %v1459_v57 }
 0x1be   : > { %1333 = vmatpush3.bf16.msra.mxu0 %v1332_v2 }
 0x1bf   : > { %1334 = vmatprep.subr.bf16.mxu0 %v1459_v57 }
 0x1c2   : > { %1336 = vmatpush3.bf16.msra.mxu0 %v1335_v5 }
 0x1c3   : > { %1337 = vmatprep.subr.bf16.mxu0 %v1459_v57 }
 0x1c6   : > { %1339 = vmatpush3.bf16.msra.mxu0 %v1338_v8 }
 0x1c7   : > { %1340 = vmatprep.subr.bf16.mxu0 %v1459_v57 }
 0x1ca   : > { %1342 = vmatpush3.bf16.msra.mxu0 %v1341_v11 }
 0x1cb   : > { %1343 = vmatprep.subr.bf16.mxu0 %v1459_v57 }
 0x1ce   : > { %1345 = vmatpush3.bf16.msra.mxu0 %v1344_v15 }
 0x284   : > { %v1104_v18 = vpop.f32.mrb[2].mxu0 }
 0x285   : > { %v1139_v19 = vpop.f32.mrb[2].mxu1  ;;  %v1105_v21 = vpop.f32.mrb[3].mxu0 }
 0x286   : > { %v1106_v22 = vadd.f32 %v1105_v21, %v1104_v18  ;;  %v1140_v23 = vpop.f32.mrb[3].mxu1 }
 0x287   : > { %v1141_v24 = vadd.f32 %v1140_v23, %v1139_v19 }
 0x288   : > { %v782_v25 = vadd.f32 %v1106_v22, %v1064_v20 }
 0x28a   : > { %v852_v26 = vadd.f32 %v1141_v24, %v782_v25 }
 0x28c   : > { %v1065_v27 = vmul.f32 -1.442695, %v852_v26 }
 0x28e   : > { %1399 = vpow2.f32 %v1065_v27 }
 0x298   : > { %v1400_v28 = vpop.eup %1399 }
 0x299   : > { %v858_v13 = vadd.f32 1.0, %v1400_v28 }
 0x29b   : > { %1401 = vrcp.f32 %v858_v13 }
 0x2a5   : > { %v1402_v29 = vpop.eup %1401 }
 0x2a6   : > { %v861_v30 = vmul.f32 %v1402_v29, %v852_v26 }
 0x2a8   : > { %1192 = vmatmul.mubr.f32.vlgmr.msra.gmra.mrb[4].mxu0 %v861_v30 }
 0x37b   : > { %v958_v34 = vpop.f32.mrb[4].mxu0 }
 0x37c   : > { %v962_v36 = vadd.f32 %v958_v34, %v875_v33  ;;  %v1193_v37 = vpop.f32.mrb[5].mxu0 }
 0x37e   : > { %v970_v38 = vadd.f32 %v1067_v35, %v962_v36 }
 0x380   : > { %971 = vst [vmem:[#allocation3] sm:$0x3] %v970_v38 }
 0x381 PF: > { %p1993_p7 = scmp.eq.s32.totalorder %s1052_s12, 1  ;;  %s1462_s29 = smov [#allocation3]  }
 0x382   : > { %s981_s30 = sshll.u32 %s1462_s29, 4  ;;  %s982_s30 = int_to_ptr.vmem [resolvable:$true] %s981_s30 }
 0x383   : > { %s1403_s14 = scalar_lea.vmem %s982_s30, 32  ;;  %p1410_p11 = scmp.lt.s32.totalorder %s982_s30, %s982_s30 }
 0x384   : > { %p1404_p8 = scmp.ne.s32.totalorder %s982_s30, %s1403_s14  ;;  %p1411_p12 = scmp.lt.s32.totalorder %s1403_s14, %s1403_s14 }
 0x386   : > { %p1405_p9 = pnand %p1404_p8, %p1993_p7  ;;  %p1412_p13 = por %p1411_p12, %p1410_p11 }
 0x388   : > { %p1406_p10 = pneg %p1405_p9 }
 0x38a   : > { %p1413_p0 = pnand %p1412_p13, %p1406_p10 }
 0x38c   : > { %1416 = shalt.err (!%p1413_p0)
}
 0x38d   : > { %s1417_s12 = scalar_lea.hbm %s2037_s9, 32 }
 0x38e   : > { %p1418_p1 = scmp.ne.s32.totalorder %s2037_s9, %s1417_s12  ;;  %p1423_p4 = scmp.lt.u32.totalorder %s1417_s12, %s2037_s9 }
 0x390   : > { %p1419_p2 = pnand %p1418_p1, %p1993_p7 }
 0x392   : > { %p1420_p3 = pneg %p1419_p2 }
 0x394   : > { %p1425_p5 = pnand %p1423_p4, %p1420_p3 }
 0x396   : > { %1428 = shalt.err (!%p1425_p5)
}
 0x397   : > { %1347 = dma.vmem_to_hbm [thread:$0]  (%p1993_p7), %s982_s30, 32, %s2037_s9, [#allocation4]  }
 0x398   : > { %1442 = dma.done.wait (%p1993_p7), [#allocation4], 32  }
 0x399   : > { %1444 = vsyncadd (%p1993_p7), [#allocation4], 4294967264 }
 0x39a PF: > { %s20_s11 = sadd.s32 1, %s1455_s11   ;;  %s2039_s30 = smov %s1451_s10 }
 0x39b   : > { %p17_p6 = scmp.ge.s32.totalorder %s20_s11, 4   ;;  %s2040_s10 = smov %s2042_s13 }
 0x39d   :  { %19 = sbr.rel (!%p17_p6) target bundleno = 2 (0x2), region = 95 }
 0x3a4   :  { %994 = vsyncpa [#allocation4], 1 }
 0x3a5   :  { %996 = vsyncpa [#allocation4 + $0x1], 1 }

</bundles_post_ra>
